<compile_context>
chip_gen: v7x
topology: tpu7x:2x2x1
jax: 0.10.0
libtpu: 0.0.40
codegen_flags: <defaults>
</compile_context>

<pallas_src>
import functools

import jax
import jax.numpy as jnp
from jax import lax
from jax.experimental import pallas as pl
from jax.experimental.pallas import tpu as pltpu


def _round_up(x, m):
    return (x + m - 1) // m * m


@functools.lru_cache(maxsize=None)
def _pltpu_roll_matches_numpy():
    """True iff pltpu.roll(x, s, ax)[j] == x[(j - s) % N] (np.roll convention).

    The im2col lane rotations are static, but their sign depends on this
    convention; probing once keeps the conv taps provably correct.
    """

    def k(x_ref, o_ref):
        o_ref[...] = pltpu.roll(x_ref[...], 1, 1)

    x = jnp.tile(jnp.arange(128, dtype=jnp.float32)[None, :], (8, 1))
    y = pl.pallas_call(
        k, out_shape=jax.ShapeDtypeStruct((8, 128), jnp.float32)
    )(x)
    return bool(y[0, 0] == 127.0)


def _make_stack_kernel(D, H, W, channels, cpads, roll_matches_np,
                       *, eps=1e-5, negative_slope=0.01):
    """channels = [Cin, C1, ..., Ck]; the kernel fuses all k conv blocks."""
    DHW = D * H * W
    HW = H * W
    num_blocks = len(channels) - 1

    def kernel(x_ref, *refs):
        param_refs = refs[:4 * num_blocks]
        o_ref = refs[4 * num_blocks]
        patch_ref = refs[4 * num_blocks + 1]        # (2, 9*cpad_max, DHW) f32

        # ---- in-kernel boundary masks (zero-padding halo), one (1, DHW) f32
        # per non-center tap.  Cheap VPU/iota work that hides under the MXU;
        # removes the previous (27, DHW) HBM->VMEM block entirely.
        pos = lax.broadcasted_iota(jnp.int32, (1, DHW), 1)
        d_idx = pos // HW
        h_idx = (pos // W) % H
        w_idx = pos % W
        masks = {}
        for kd in range(3):
            for kh in range(3):
                for kw in range(3):
                    dd, dh, dw = kd - 1, kh - 1, kw - 1
                    if (dd, dh, dw) == (0, 0, 0):
                        continue
                    m = ((d_idx + dd >= 0) & (d_idx + dd < D) &
                         (h_idx + dh >= 0) & (h_idx + dh < H) &
                         (w_idx + dw >= 0) & (w_idx + dw < W))
                    masks[(kd, kh, kw)] = m.astype(jnp.float32)

        act = x_ref[...].astype(jnp.float32)        # (Cin, DHW), lane-dense

        for blk in range(num_blocks):
            w_ref, b_ref, g_ref, bt_ref = param_refs[4 * blk:4 * blk + 4]
            cin = channels[blk]
            cout = channels[blk + 1]
            cpad = cpads[blk]                       # round_up(cin, 8)

            # 8-sublane-aligned activation rows (zero-pad the channel axis).
            if cin < cpad:
                act_p = jnp.concatenate(
                    [act, jnp.zeros((cpad - cin, DHW), jnp.float32)], axis=0)
            else:
                act_p = act

            # ---- Conv3d as 3 accumulated (cout, 9*cpad) @ (9*cpad, DHW) dots,
            # one per kd plane.  The per-plane patch chunk is built into an
            # alternating scratch slot so the next chunk's rolls/masks/stores
            # overlap the previous chunk's MXU contraction.
            acc = jnp.zeros((cout, DHW), jnp.float32)
            for kd in range(3):
                slot = kd & 1
                for kh in range(3):
                    for kw in range(3):
                        dd, dh, dw = kd - 1, kh - 1, kw - 1
                        r0 = (kh * 3 + kw) * cpad
                        if (dd, dh, dw) == (0, 0, 0):
                            patch_ref[slot, r0:r0 + cpad, :] = act_p
                        else:
                            off = (dd * HW + dh * W + dw) % DHW
                            shift = (DHW - off) if roll_matches_np else off
                            rolled = pltpu.roll(act_p, shift, axis=1)
                            patch_ref[slot, r0:r0 + cpad, :] = (
                                rolled * masks[(kd, kh, kw)])
                acc = acc + jnp.dot(
                    w_ref[kd], patch_ref[slot, 0:9 * cpad, :],
                    preferred_element_type=jnp.float32)

            # TODO(synk): Dropout(p=0.5) is eval-mode identity; training-mode
            # dropout would need pltpu.prng_seed/prng_random_bits masking + 2x.

            # ---- bias + GroupNorm(num_groups=cout//2) + affine folded into a
            # single per-channel scale/shift.  Statistics are computed on the
            # raw conv output and adjusted analytically for the bias (all
            # (cout, 1) scalar work).
            ch_sum = jnp.sum(acc, axis=1, keepdims=True)        # (cout, 1)
            ch_sq = jnp.sum(acc * acc, axis=1, keepdims=True)   # (cout, 1)
            b = b_ref[...]                                      # (cout, 1)
            n_sp = jnp.float32(DHW)
            sum_z = ch_sum + b * n_sp                           # sum (a + b)
            sum_z2 = ch_sq + 2.0 * b * ch_sum + b * b * n_sp    # sum (a + b)^2

            c_idx = lax.broadcasted_iota(jnp.int32, (cout, 1), 0)
            is_even = (c_idx & 1) == 0

            def pair_sum(v):
                nxt = jnp.roll(v, -1, axis=0)    # v[c + 1]
                prv = jnp.roll(v, 1, axis=0)     # v[c - 1]
                return v + jnp.where(is_even, nxt, prv)

            cnt = jnp.float32(2 * DHW)                 # elements per group
            mean = pair_sum(sum_z) / cnt
            var = jnp.maximum(pair_sum(sum_z2) / cnt - mean * mean, 0.0)
            inv = lax.rsqrt(var + eps)
            scale = inv * g_ref[...]                             # (cout, 1)
            shift_c = (b - mean) * scale + bt_ref[...]           # (cout, 1)

            y = acc * scale + shift_c                   # one wide FMA
            act = jnp.maximum(y, negative_slope * y)    # LeakyReLU(0.01)

        o_ref[...] = act.astype(o_ref.dtype)

    return kernel


def nnunet_conv_block_stack(x_ncdhw, params):
    """nnUnetConvBlockStack forward.

    x_ncdhw: (N, Cin, D, H, W), PyTorch layout.
    params:  list of (w, b, gamma, beta) per block; w in DHWIO (3,3,3,cin,cout).
    """
    N, Cin, D, H, W = x_ncdhw.shape
    DHW = D * H * W
    channels = [int(Cin)] + [int(w.shape[-1]) for (w, _, _, _) in params]
    cpads = [_round_up(c, 8) for c in channels[:-1]]
    cpad_max = max(cpads)
    Cout = channels[-1]

    x_flat = x_ncdhw.reshape(N, Cin, DHW)

    in_specs = [pl.BlockSpec((None, Cin, DHW), lambda n: (n, 0, 0))]
    flat_args = [x_flat]
    for blk, (w, b, gamma, beta) in enumerate(params):
        cin_b, cout_b = int(w.shape[3]), int(w.shape[4])
        cpad_b = cpads[blk]
        # (cout, kd, kh, kw, cin) -> zero-pad cin to cpad -> (3, cout, 9*cpad)
        # so column ((kh*3+kw)*cpad + c) of plane kd is w[kd,kh,kw,c,co].
        w_perm = jnp.transpose(w, (4, 0, 1, 2, 3))
        w_perm = jnp.pad(
            w_perm, ((0, 0), (0, 0), (0, 0), (0, 0), (0, cpad_b - cin_b)))
        w_kd = jnp.transpose(w_perm, (1, 0, 2, 3, 4)).reshape(
            3, cout_b, 9 * cpad_b)
        flat_args += [w_kd, b.reshape(cout_b, 1),
                      gamma.reshape(cout_b, 1), beta.reshape(cout_b, 1)]
        in_specs += [
            pl.BlockSpec((3, cout_b, 9 * cpad_b), lambda n: (0, 0, 0)),
            pl.BlockSpec((cout_b, 1), lambda n: (0, 0)),
            pl.BlockSpec((cout_b, 1), lambda n: (0, 0)),
            pl.BlockSpec((cout_b, 1), lambda n: (0, 0)),
        ]

    kernel = _make_stack_kernel(D, H, W, channels, cpads,
                                _pltpu_roll_matches_numpy())

    out_flat = pl.pallas_call(
        kernel,
        out_shape=jax.ShapeDtypeStruct((N, Cout, DHW), x_ncdhw.dtype),
        grid_spec=pltpu.PrefetchScalarGridSpec(
            num_scalar_prefetch=0,
            grid=(N,),
            in_specs=in_specs,
            out_specs=pl.BlockSpec((None, Cout, DHW), lambda n: (n, 0, 0)),
            scratch_shapes=[pltpu.VMEM((2, 9 * cpad_max, DHW), jnp.float32)],
        ),
        compiler_params=pltpu.CompilerParams(
            dimension_semantics=("parallel",)),
    )(*flat_args)

    return out_flat.reshape(N, Cout, D, H, W)


# ---------------------------- reference (plain JAX) --------------------------
def _reference_block(x_ndhwc, w, b, gamma, beta, eps=1e-5, slope=0.01):
    y = lax.conv_general_dilated(
        x_ndhwc, w, window_strides=(1, 1, 1), padding=((1, 1), (1, 1), (1, 1)),
        dimension_numbers=("NDHWC", "DHWIO", "NDHWC"))
    y = y + b
    N, D, H, W, C = y.shape
    G = C // 2
    yg = y.reshape(N, D, H, W, G, 2)
    mean = jnp.mean(yg, axis=(1, 2, 3, 5), keepdims=True)
    var = jnp.mean((yg - mean) ** 2, axis=(1, 2, 3, 5), keepdims=True)
    yn = ((yg - mean) * lax.rsqrt(var + eps)).reshape(N, D, H, W, C)
    yn = yn * gamma + beta
    return jnp.where(yn >= 0, yn, slope * yn)


def _reference_stack(x_ncdhw, params):
    x = jnp.transpose(x_ncdhw, (0, 2, 3, 4, 1))
    for (w, b, gamma, beta) in params:
        x = _reference_block(x, w, b, gamma, beta)
    return jnp.transpose(x, (0, 4, 1, 2, 3))


# ------------------------------------ main ------------------------------------
if __name__ == "__main__":
    key = jax.random.PRNGKey(0)

    N = 2
    in_channels = 4
    out_channels = 8          # must be even (GroupNorm groups = C // 2)
    D = H = W = 8             # DHW = 512 -> lane-dense
    num_blocks = 2

    # Deterministic parameter init (shapes follow nnUnetConvBlock.__init__).
    params = []
    cin = in_channels
    for _ in range(num_blocks):
        key, kw_, kb_, kg_, kbt_ = jax.random.split(key, 5)
        fan_in = cin * 27
        w = jax.random.normal(kw_, (3, 3, 3, cin, out_channels),
                              jnp.float32) / jnp.sqrt(jnp.float32(fan_in))
        b = 0.05 * jax.random.normal(kb_, (out_channels,), jnp.float32)
        gamma = 1.0 + 0.1 * jax.random.normal(kg_, (out_channels,), jnp.float32)
        beta = 0.1 * jax.random.normal(kbt_, (out_channels,), jnp.float32)
        params.append((w, b, gamma, beta))
        cin = out_channels

    key, kx = jax.random.split(key)
    x = jax.random.normal(kx, (N, in_channels, D, H, W), jnp.float32)  # NCDHW

    out = jax.block_until_ready(nnunet_conv_block_stack(x, params))
    ref = jax.block_until_ready(_reference_stack(x, params))

    assert out.shape == (N, out_channels, D, H, W), out.shape
    assert bool(jnp.all(jnp.isfinite(out)))
    err = float(jnp.max(jnp.abs(out - ref)))
    assert jnp.allclose(out, ref, rtol=1e-3, atol=1e-3), err

    print("KERNEL_OK")
</pallas_src>

<mosaic_0001>
module attributes {stable_mosaic.version = 11 : i64} {
  func.func @k(%arg0: memref<8x128xf32, #tpu.memory_space<vmem>>, %arg1: memref<8x128xf32, #tpu.memory_space<vmem>>) attributes {dimension_semantics = [], scalar_prefetch = 0 : i64, scratch_operands = 0 : i64, tpu.core_type = #tpu.core_type<tc>} {
    %c0 = arith.constant 0 : index
    %c0_0 = arith.constant 0 : index
    %0 = vector.load %arg0[%c0, %c0_0] : memref<8x128xf32, #tpu.memory_space<vmem>>, vector<8x128xf32>
    %c1_i32 = arith.constant 1 : i32
    %1 = tpu.dynamic_rotate %0 by %c1_i32 dim 1 : vector<8x128xf32>, i32 -> vector<8x128xf32>
    %c0_1 = arith.constant 0 : index
    %c0_2 = arith.constant 0 : index
    %2 = vector.load %arg1[%c0_1, %c0_2] : memref<8x128xf32, #tpu.memory_space<vmem>>, vector<8x128xf32>
    tpu.vector_store %arg1[%c0_1, %c0_2], %1 {strides = array<i32>} : memref<8x128xf32, #tpu.memory_space<vmem>>, vector<8x128xf32>,
    return
  }
}

</mosaic_0001>

<bundles_post_ra>
// kernel: tpu_custom_call.1
= control target key start
LH: loop header
LB: loop body
LE: loop exit
PB: predicated region body
PF: predicated region fallthrough
CT: control target
= control target key end

     0   :  { %6 = vsyncpa [#allocation3], 0  ;;  %s128_s0 = inlined_call_operand.hbm [shape: f32[8,128], index: 0, kind: input, shape index: {}]   ;;  %s129_s1 = inlined_call_operand.hbm [shape: f32[8,128], index: 1, kind: output, shape index: {}]  }
   0x1   :  { %7 = vsyncpa [#allocation4], 0  ;;  %s91_s6 = smov [#allocation2]   ;;  %s43_s10 = scalar_lea.hbm %s128_s0, 128 }
   0x2   :  { %s14_s7 = sshll.u32 %s91_s6, 4  ;;  %p44_p0 = scmp.ne.s32.totalorder %s128_s0, %s43_s10  ;;  %s15_s7 = int_to_ptr.vmem [resolvable:$true] %s14_s7 }
   0x3   :  { %p47_p1 = scmp.lt.u32.totalorder %s43_s10, %s128_s0 }
   0x5   :  { %p49_p2 = pnand %p47_p1, %p44_p0 }
   0x7   :  { %52 = shalt.err (!%p49_p2)
}
   0x8   :  { %s53_s15 = scalar_lea.vmem %s15_s7, 128  ;;  %p58_p4 = scmp.lt.s32.totalorder %s15_s7, %s15_s7 }
   0x9   :  { %p54_p3 = scmp.ne.s32.totalorder %s15_s7, %s53_s15  ;;  %p59_p5 = scmp.lt.s32.totalorder %s53_s15, %s53_s15 }
   0xb   :  { %p60_p6 = por %p59_p5, %p58_p4 }
   0xd   :  { %p61_p7 = pnand %p60_p6, %p54_p3 }
   0xf   :  { %64 = shalt.err (!%p61_p7)
}
  0x10   :  { %17 = dma.hbm_to_vmem [thread:$0]  %s128_s0, 128, %s15_s7, [#allocation3]  }
  0x11   :  { %87 = dma.done.wait [#allocation3], 128  }
  0x12   :  { %88 = vsyncadd [#allocation3], 4294967168  ;;  %v21_v0 = vld [vmem:[#allocation2] sm:$0xff]  ;;  %s92_s18 = smov 1   ;;  %s93_s19 = smov [#allocation5]  }
  0x13   :  { %22 = vrot.lane.b32.xlu0 %v21_v0, %s92_s18  ;;  %s31_s20 = sshll.u32 %s93_s19, 4  ;;  %s32_s20 = int_to_ptr.vmem [resolvable:$true] %s31_s20 }
  0x14   :  { %s65_s21 = scalar_lea.vmem %s32_s20, 128  ;;  %p70_p9 = scmp.lt.s32.totalorder %s32_s20, %s32_s20 }
  0x15   :  { %p66_p8 = scmp.ne.s32.totalorder %s32_s20, %s65_s21  ;;  %p71_p10 = scmp.lt.s32.totalorder %s65_s21, %s65_s21 }
  0x17   :  { %p72_p11 = por %p71_p10, %p70_p9 }
  0x19   :  { %p73_p12 = pnand %p72_p11, %p66_p8 }
  0x85   :  { %v23_v1 = vpop.permute.xlu0 %22 }
  0x86   :  { %24 = vst [vmem:[#allocation5] sm:$0xff] %v23_v1 }
  0x87   :  { %76 = shalt.err (!%p73_p12)
}
  0x88   :  { %s77_s0 = scalar_lea.hbm %s129_s1, 128 }
  0x89   :  { %p78_p13 = scmp.ne.s32.totalorder %s129_s1, %s77_s0  ;;  %p81_p0 = scmp.lt.u32.totalorder %s77_s0, %s129_s1 }
  0x8b   :  { %p83_p1 = pnand %p81_p0, %p78_p13 }
  0x8d   :  { %86 = shalt.err (!%p83_p1)
}
  0x8e   :  { %34 = dma.vmem_to_hbm [thread:$0]  %s32_s20, 128, %s129_s1, [#allocation4]  }
  0x8f   :  { %89 = dma.done.wait [#allocation4], 128  }
  0x90   :  { %90 = vsyncadd [#allocation4], 4294967168 }
  0x91   :  { %38 = vsyncpa [#allocation3], 1 }
  0x92   :  { %39 = vsyncpa [#allocation4], 1 }

</bundles_post_ra>
